<compile_context>
chip_gen: v6e
topology: v6e:2x2x1
jax: 0.10.0
libtpu: 0.0.40
codegen_flags: <defaults>
</compile_context>

<pallas_src>
import functools

import jax
import jax.numpy as jnp
from jax.experimental import pallas as pl
from jax.experimental.pallas import tpu as pltpu

_LANES = 128
_SUBLANES = 8


def _round_up(x, m):
    return ((x + m - 1) // m) * m


def _lane_weights(shape, lat_w, lon_w):
    # flat element k has coordinate k % 2 (0 = lateral, 1 = longitudinal);
    # lane parity == k parity because 128 is even.
    lane = jax.lax.broadcasted_iota(jnp.int32, shape, 1)
    return jnp.where(lane % 2 == 0, jnp.float32(lat_w), jnp.float32(lon_w))


def _l1_kernel_masked(pred_ref, targ_ref, mask_ref, lsum_ref, msum_ref,
                      *, lat_w, lon_w):
    s = pl.program_id(1)

    @pl.when(s == 0)
    def _():
        lsum_ref[...] = jnp.zeros_like(lsum_ref)
        msum_ref[...] = jnp.zeros_like(msum_ref)

    p = pred_ref[...].astype(jnp.float32)
    t = targ_ref[...].astype(jnp.float32)
    m = mask_ref[...].astype(jnp.float32)
    diff = jnp.abs(p - t)
    w = _lane_weights(diff.shape, lat_w, lon_w)
    weighted = diff * w * m
    # Deferred reduction: fold the tile into an (8, 128) partial with VPU adds.
    lsum_ref[...] += weighted.reshape(-1, _SUBLANES, _LANES).sum(axis=0)
    msum_ref[...] += m.reshape(-1, _SUBLANES, _LANES).sum(axis=0)


def _l1_kernel_nomask(pred_ref, targ_ref, lsum_ref, *, lat_w, lon_w):
    s = pl.program_id(1)

    @pl.when(s == 0)
    def _():
        lsum_ref[...] = jnp.zeros_like(lsum_ref)

    p = pred_ref[...].astype(jnp.float32)
    t = targ_ref[...].astype(jnp.float32)
    diff = jnp.abs(p - t)
    w = _lane_weights(diff.shape, lat_w, lon_w)
    lsum_ref[...] += (diff * w).reshape(-1, _SUBLANES, _LANES).sum(axis=0)


def _tiling(total):
    rows = -(-total // _LANES)
    tile_rows = min(1024, _round_up(rows, _SUBLANES))        # <= 512 KiB / input / buffer
    num_tiles = -(-rows // tile_rows)
    grid_p = min(4, num_tiles)                               # leading 'parallel' axis
    num_tiles_p = _round_up(num_tiles, grid_p)
    steps = num_tiles_p // grid_p
    rows_padded = num_tiles_p * tile_rows
    return rows_padded, tile_rows, grid_p, steps


def _to_slab(flat, rows_padded):
    pad = rows_padded * _LANES - flat.shape[0]
    if pad:
        flat = jnp.pad(flat, (0, pad))                       # zero pad -> contributes 0
    return flat.reshape(rows_padded, _LANES)


def _partial_sums(pred_slab, targ_slab, mask_slab, tile_rows, grid_p, steps,
                  lat_w, lon_w):
    data_spec = pl.BlockSpec((tile_rows, _LANES),
                             lambda p_i, s_i: (p_i * steps + s_i, 0))
    acc_spec = pl.BlockSpec((None, _SUBLANES, _LANES),
                            lambda p_i, s_i: (p_i, 0, 0))
    acc_shape = jax.ShapeDtypeStruct((grid_p, _SUBLANES, _LANES), jnp.float32)
    cp = pltpu.CompilerParams(dimension_semantics=("parallel", "arbitrary"))

    if mask_slab is None:
        kernel = functools.partial(_l1_kernel_nomask, lat_w=lat_w, lon_w=lon_w)
        lsum = pl.pallas_call(
            kernel,
            out_shape=acc_shape,
            grid=(grid_p, steps),
            in_specs=[data_spec, data_spec],
            out_specs=acc_spec,
            compiler_params=cp,
        )(pred_slab, targ_slab)
        return lsum, None

    kernel = functools.partial(_l1_kernel_masked, lat_w=lat_w, lon_w=lon_w)
    lsum, msum = pl.pallas_call(
        kernel,
        out_shape=(acc_shape, acc_shape),
        grid=(grid_p, steps),
        in_specs=[data_spec, data_spec, data_spec],
        out_specs=(acc_spec, acc_spec),
        compiler_params=cp,
    )(pred_slab, targ_slab, mask_slab)
    return lsum, msum


@functools.partial(jax.jit, static_argnames=("lat_w", "lon_w"))
def _loss_nomask(pred, target, lat_w, lon_w):
    B, N, C = pred.shape
    total = B * N * C
    rows_padded, tile_rows, grid_p, steps = _tiling(total)
    pred_s = _to_slab(pred.reshape(total), rows_padded)
    targ_s = _to_slab(target.reshape(total), rows_padded)
    lsum, _ = _partial_sums(pred_s, targ_s, None, tile_rows, grid_p, steps,
                            lat_w, lon_w)
    # torch: loss.mean() over B * n_waypoints * 2 elements
    return jnp.sum(lsum) / jnp.float32(total)


@functools.partial(jax.jit, static_argnames=("lat_w", "lon_w"))
def _loss_masked(pred, target, mask, lat_w, lon_w):
    B, N, C = pred.shape
    total = B * N * C
    rows_padded, tile_rows, grid_p, steps = _tiling(total)
    pred_s = _to_slab(pred.reshape(total), rows_padded)
    targ_s = _to_slab(target.reshape(total), rows_padded)
    mask_e = jnp.broadcast_to(mask.astype(jnp.float32)[:, :, None], (B, N, C))
    mask_s = _to_slab(mask_e.reshape(total), rows_padded)
    lsum, msum = _partial_sums(pred_s, targ_s, mask_s, tile_rows, grid_p, steps,
                               lat_w, lon_w)
    # sum of the element-expanded mask == mask.sum() * 2 exactly
    # torch: loss.sum() / (mask.sum() * 2 + 1e-8)
    return jnp.sum(lsum) / (jnp.sum(msum) + jnp.float32(1e-8))


def weighted_l1_loss(pred, target, mask=None,
                     lateral_weight=2.0, longitudinal_weight=1.5):
    """JAX/Pallas equivalent of WeightedL1Loss.forward.

    pred, target: (B, n_waypoints, 2); mask: (B, n_waypoints) or None.
    Returns a scalar f32 loss.
    """
    assert pred.shape[-1] == 2, "last dim must be 2 (lateral, longitudinal)"
    lw, gw = float(lateral_weight), float(longitudinal_weight)
    if mask is None:
        return _loss_nomask(pred, target, lw, gw)
    return _loss_masked(pred, target, mask, lw, gw)


def _reference(pred, target, mask, lat_w=2.0, lon_w=1.5):
    loss = jnp.abs(pred.astype(jnp.float32) - target.astype(jnp.float32))
    w = jnp.array([lat_w, lon_w], jnp.float32)
    loss = loss * w
    if mask is not None:
        loss = loss * mask[..., None].astype(jnp.float32)
        return loss.sum() / (mask.astype(jnp.float32).sum() * 2 + 1e-8)
    return loss.mean()


if __name__ == "__main__":
    key = jax.random.PRNGKey(0)
    k1, k2, k3 = jax.random.split(key, 3)

    B, N = 2, 8  # batch=2, n_waypoints=8, coords=2
    pred = jax.random.normal(k1, (B, N, 2), dtype=jnp.float32)
    target = jax.random.normal(k2, (B, N, 2), dtype=jnp.float32)
    mask = (jax.random.uniform(k3, (B, N)) > 0.3).astype(jnp.float32)

    # masked branch
    out_masked = jax.block_until_ready(weighted_l1_loss(pred, target, mask))
    ref_masked = _reference(pred, target, mask)

    # unmasked branch (loss.mean())
    out_plain = jax.block_until_ready(weighted_l1_loss(pred, target, None))
    ref_plain = _reference(pred, target, None)

    assert jnp.allclose(out_masked, ref_masked, rtol=1e-5, atol=1e-6), (
        out_masked, ref_masked)
    assert jnp.allclose(out_plain, ref_plain, rtol=1e-5, atol=1e-6), (
        out_plain, ref_plain)

    print("KERNEL_OK")
</pallas_src>

<mosaic_0001>
module attributes {stable_mosaic.version = 11 : i64} {
  func.func @_l1_kernel_masked(%arg0: i32, %arg1: i32, %arg2: memref<8x128xf32, #tpu.memory_space<vmem>>, %arg3: memref<8x128xf32, #tpu.memory_space<vmem>>, %arg4: memref<8x128xf32, #tpu.memory_space<vmem>>, %arg5: memref<1x8x128xf32, #tpu.memory_space<vmem>>, %arg6: memref<1x8x128xf32, #tpu.memory_space<vmem>>) attributes {dimension_semantics = [#tpu.dimension_semantics<parallel>, #tpu.dimension_semantics<arbitrary>], iteration_bounds = array<i64: 1, 1>, scalar_prefetch = 0 : i64, scratch_operands = 0 : i64, tpu.core_type = #tpu.core_type<tc>, window_params = [{transform_indices = @transform_0, window_bounds = array<i64: 8, 128>}, {transform_indices = @transform_1, window_bounds = array<i64: 8, 128>}, {transform_indices = @transform_2, window_bounds = array<i64: 8, 128>}, {transform_indices = @transform_3, window_bounds = array<i64: 1, 8, 128>}, {transform_indices = @transform_4, window_bounds = array<i64: 1, 8, 128>}]} {
    %c0_i32 = arith.constant 0 : i32
    %0 = arith.cmpi eq, %arg1, %c0_i32 : i32
    %1 = arith.extui %0 : i1 to i32
    %c0_i32_0 = arith.constant 0 : i32
    %2 = arith.cmpi ne, %1, %c0_i32_0 : i32
    scf.if %2 {
      %cst_26 = arith.constant 0.000000e+00 : f32
      %48 = vector.broadcast %cst_26 : f32 to vector<8x128xf32>
      %c0_27 = arith.constant 0 : index
      %c0_28 = arith.constant 0 : index
      %c0_29 = arith.constant 0 : index
      %49 = vector.load %arg5[%c0_27, %c0_28, %c0_29] : memref<1x8x128xf32, #tpu.memory_space<vmem>>, vector<1x8x128xf32>
      %50 = vector.shape_cast %49 : vector<1x8x128xf32> to vector<8x128xf32>
      %51 = vector.shape_cast %48 : vector<8x128xf32> to vector<1x8x128xf32>
      tpu.vector_store %arg5[%c0_27, %c0_28, %c0_29], %51 {strides = array<i32>} : memref<1x8x128xf32, #tpu.memory_space<vmem>>, vector<1x8x128xf32>,
      %cst_30 = arith.constant 0.000000e+00 : f32
      %52 = vector.broadcast %cst_30 : f32 to vector<8x128xf32>
      %c0_31 = arith.constant 0 : index
      %c0_32 = arith.constant 0 : index
      %c0_33 = arith.constant 0 : index
      %53 = vector.load %arg6[%c0_31, %c0_32, %c0_33] : memref<1x8x128xf32, #tpu.memory_space<vmem>>, vector<1x8x128xf32>
      %54 = vector.shape_cast %53 : vector<1x8x128xf32> to vector<8x128xf32>
      %55 = vector.shape_cast %52 : vector<8x128xf32> to vector<1x8x128xf32>
      tpu.vector_store %arg6[%c0_31, %c0_32, %c0_33], %55 {strides = array<i32>} : memref<1x8x128xf32, #tpu.memory_space<vmem>>, vector<1x8x128xf32>,
    } else {
    }
    %c0 = arith.constant 0 : index
    %c0_1 = arith.constant 0 : index
    %3 = vector.load %arg2[%c0, %c0_1] : memref<8x128xf32, #tpu.memory_space<vmem>>, vector<8x128xf32>
    %c0_2 = arith.constant 0 : index
    %c0_3 = arith.constant 0 : index
    %4 = vector.load %arg3[%c0_2, %c0_3] : memref<8x128xf32, #tpu.memory_space<vmem>>, vector<8x128xf32>
    %c0_4 = arith.constant 0 : index
    %c0_5 = arith.constant 0 : index
    %5 = vector.load %arg4[%c0_4, %c0_5] : memref<8x128xf32, #tpu.memory_space<vmem>>, vector<8x128xf32>
    %6 = arith.subf %3, %4 : vector<8x128xf32>
    %7 = math.absf %6 : vector<8x128xf32>
    %8 = tpu.iota {dimensions = array<i32: 1>} : vector<8x128xi32>
    %c2_i32 = arith.constant 2 : i32
    %c0_i32_6 = arith.constant 0 : i32
    %9 = arith.cmpi eq, %c2_i32, %c0_i32_6 : i32
    %c1_i32 = arith.constant 1 : i32
    %10 = arith.select %9, %c1_i32, %c2_i32 : i32
    %11 = vector.broadcast %10 : i32 to vector<8x128xi32>
    %12 = arith.remsi %8, %11 : vector<8x128xi32>
    %c0_i32_7 = arith.constant 0 : i32
    %13 = vector.broadcast %c0_i32_7 : i32 to vector<8x128xi32>
    %14 = arith.cmpi ne, %12, %13 : vector<8x128xi32>
    %c0_i32_8 = arith.constant 0 : i32
    %15 = vector.broadcast %c0_i32_8 : i32 to vector<8x128xi32>
    %16 = arith.cmpi slt, %12, %15 : vector<8x128xi32>
    %c0_i32_9 = arith.constant 0 : i32
    %17 = arith.cmpi slt, %10, %c0_i32_9 : i32
    %18 = vector.broadcast %17 : i1 to vector<8x128xi1>
    %19 = vector.broadcast %18 : vector<8x128xi1> to vector<8x128xi1>
    %20 = arith.xori %16, %19 : vector<8x128xi1>
    %21 = arith.andi %20, %14 : vector<8x128xi1>
    %22 = vector.broadcast %10 : i32 to vector<8x128xi32>
    %23 = arith.addi %12, %22 : vector<8x128xi32>
    %24 = arith.select %21, %23, %12 : vector<8x128xi1>, vector<8x128xi32>
    %c0_i32_10 = arith.constant 0 : i32
    %25 = vector.broadcast %c0_i32_10 : i32 to vector<8x128xi32>
    %26 = arith.cmpi eq, %24, %25 : vector<8x128xi32>
    %cst = arith.constant 2.000000e+00 : f32
    %cst_11 = arith.constant 1.500000e+00 : f32
    %27 = vector.broadcast %cst : f32 to vector<8x128xf32>
    %28 = vector.broadcast %cst_11 : f32 to vector<8x128xf32>
    %29 = arith.select %26, %27, %28 : vector<8x128xi1>, vector<8x128xf32>
    %30 = arith.mulf %7, %29 : vector<8x128xf32>
    %31 = arith.mulf %30, %5 : vector<8x128xf32>
    %c0_12 = arith.constant 0 : index
    %c0_13 = arith.constant 0 : index
    %c0_14 = arith.constant 0 : index
    %32 = vector.load %arg5[%c0_12, %c0_13, %c0_14] : memref<1x8x128xf32, #tpu.memory_space<vmem>>, vector<1x8x128xf32>
    %33 = vector.shape_cast %32 : vector<1x8x128xf32> to vector<8x128xf32>
    %34 = vector.shape_cast %31 : vector<8x128xf32> to vector<1x8x128xf32>
    %cst_15 = arith.constant dense<0.000000e+00> : vector<8x128xf32>
    %35 = vector.multi_reduction <add>, %34, %cst_15 [0] : vector<1x8x128xf32> to vector<8x128xf32>
    %36 = arith.addf %33, %35 : vector<8x128xf32>
    %c0_16 = arith.constant 0 : index
    %c0_17 = arith.constant 0 : index
    %c0_18 = arith.constant 0 : index
    %37 = vector.load %arg5[%c0_16, %c0_17, %c0_18] : memref<1x8x128xf32, #tpu.memory_space<vmem>>, vector<1x8x128xf32>
    %38 = vector.shape_cast %37 : vector<1x8x128xf32> to vector<8x128xf32>
    %39 = vector.shape_cast %36 : vector<8x128xf32> to vector<1x8x128xf32>
    tpu.vector_store %arg5[%c0_16, %c0_17, %c0_18], %39 {strides = array<i32>} : memref<1x8x128xf32, #tpu.memory_space<vmem>>, vector<1x8x128xf32>,
    %c0_19 = arith.constant 0 : index
    %c0_20 = arith.constant 0 : index
    %c0_21 = arith.constant 0 : index
    %40 = vector.load %arg6[%c0_19, %c0_20, %c0_21] : memref<1x8x128xf32, #tpu.memory_space<vmem>>, vector<1x8x128xf32>
    %41 = vector.shape_cast %40 : vector<1x8x128xf32> to vector<8x128xf32>
    %42 = vector.shape_cast %5 : vector<8x128xf32> to vector<1x8x128xf32>
    %cst_22 = arith.constant dense<0.000000e+00> : vector<8x128xf32>
    %43 = vector.multi_reduction <add>, %42, %cst_22 [0] : vector<1x8x128xf32> to vector<8x128xf32>
    %44 = arith.addf %41, %43 : vector<8x128xf32>
    %c0_23 = arith.constant 0 : index
    %c0_24 = arith.constant 0 : index
    %c0_25 = arith.constant 0 : index
    %45 = vector.load %arg6[%c0_23, %c0_24, %c0_25] : memref<1x8x128xf32, #tpu.memory_space<vmem>>, vector<1x8x128xf32>
    %46 = vector.shape_cast %45 : vector<1x8x128xf32> to vector<8x128xf32>
    %47 = vector.shape_cast %44 : vector<8x128xf32> to vector<1x8x128xf32>
    tpu.vector_store %arg6[%c0_23, %c0_24, %c0_25], %47 {strides = array<i32>} : memref<1x8x128xf32, #tpu.memory_space<vmem>>, vector<1x8x128xf32>,
    return
  }
  func.func @transform_0(%arg0: i32, %arg1: i32) -> (i32, i32) {
    %c1_i32 = arith.constant 1 : i32
    %0 = arith.muli %arg0, %c1_i32 : i32
    %1 = arith.addi %0, %arg1 : i32
    %c0_i32 = arith.constant 0 : i32
    %c0_i32_0 = arith.constant 0 : i32
    return %1, %c0_i32 : i32, i32
  }
  func.func @transform_1(%arg0: i32, %arg1: i32) -> (i32, i32) {
    %c1_i32 = arith.constant 1 : i32
    %0 = arith.muli %arg0, %c1_i32 : i32
    %1 = arith.addi %0, %arg1 : i32
    %c0_i32 = arith.constant 0 : i32
    %c0_i32_0 = arith.constant 0 : i32
    return %1, %c0_i32 : i32, i32
  }
  func.func @transform_2(%arg0: i32, %arg1: i32) -> (i32, i32) {
    %c1_i32 = arith.constant 1 : i32
    %0 = arith.muli %arg0, %c1_i32 : i32
    %1 = arith.addi %0, %arg1 : i32
    %c0_i32 = arith.constant 0 : i32
    %c0_i32_0 = arith.constant 0 : i32
    return %1, %c0_i32 : i32, i32
  }
  func.func @transform_3(%arg0: i32, %arg1: i32) -> (i32, i32, i32) {
    %c0_i32 = arith.constant 0 : i32
    %c0_i32_0 = arith.constant 0 : i32
    %c0_i32_1 = arith.constant 0 : i32
    return %arg0, %c0_i32, %c0_i32_0 : i32, i32, i32
  }
  func.func @transform_4(%arg0: i32, %arg1: i32) -> (i32, i32, i32) {
    %c0_i32 = arith.constant 0 : i32
    %c0_i32_0 = arith.constant 0 : i32
    %c0_i32_1 = arith.constant 0 : i32
    return %arg0, %c0_i32, %c0_i32_0 : i32, i32, i32
  }
}

</mosaic_0001>

<bundles_post_ra>
// kernel: _loss_masked.1
= control target key start
LH: loop header
LB: loop body
LE: loop exit
PB: predicated region body
PF: predicated region fallthrough
CT: control target
= control target key end

     0   :  { %v78_v0 = vlaneseq  ;;  %v132_v8 = vmov 1.5   ;;  %s173_s0 = inlined_call_operand.vmem [shape: f32[8,128], index: 0, kind: input, shape index: {}]   ;;  %s174_s1 = inlined_call_operand.vmem [shape: f32[8,128], index: 1, kind: input, shape index: {}]   ;;  %s175_s2 = inlined_call_operand.vmem [shape: f32[8,128], index: 2, kind: input, shape index: {}]   ;;  %s176_s4 = inlined_call_operand.vmem [shape: f32[1,8,128], index: 4, kind: output, shape index: {1}]   ;;  %s177_s3 = inlined_call_operand.vmem [shape: f32[1,8,128], index: 3, kind: output, shape index: {0}]  }
   0x1   :  { %v73_v1 = vld [vmem:[%s173_s0] sm:$0xff] }
   0x2   :  { %v74_v2 = vld [vmem:[%s174_s1] sm:$0xff]  ;;  %v79_v5 = vand.u32 127, %v78_v0 }
   0x3   :  { %v75_v3 = vld [vmem:[%s175_s2] sm:$0xff]  ;;  %v76_v4 = vsub.f32 %v73_v1, %v74_v2 }
   0x4   :  { %v84_v7 = vand.u32 1, %v79_v5  ;;  %103 = vst [vmem:[%s176_s4] sm:$0xff] %v75_v3 }
   0x5   :  { %v77_v6 = vand.u32 2147483647, %v76_v4 }
   0x6   :  { %vm92_vm0 = vcmp.eq.s32.totalorder %v84_v7, 0 }
   0x7   :  { %v93_v9 = vsel %vm92_vm0, 2.0, %v132_v8 }
   0x8   :  { %v94_v10 = vmul.f32 %v93_v9, %v77_v6 }
   0xa   :  { %v95_v11 = vmul.f32 %v94_v10, %v75_v3 }
   0xc   :  { %99 = vst [vmem:[%s177_s3] sm:$0xff] %v95_v11 }

</bundles_post_ra>
